<compile_context>
chip_gen: v7x
topology: tpu7x:2x2x1
jax: 0.10.0
libtpu: 0.0.40
codegen_flags: <defaults>
</compile_context>

<pallas_src>
import math
from functools import partial

import jax
import jax.numpy as jnp
from jax.experimental import pallas as pl
from jax.experimental.pallas import tpu as pltpu


# ---------------------------------------------------------------------------
# Small helpers
# ---------------------------------------------------------------------------
def _cdiv(a, b):
    return -(-a // b)


def _int_pow(x, g):
    """x**g for integer g >= 0 via explicit multiplies (VALU only, no EUP pow)."""
    if g == 0:
        return jnp.ones_like(x)
    result = None
    base = x
    while g:
        if g & 1:
            result = base if result is None else result * base
        g >>= 1
        if g:
            base = base * base
    return result


def _ingest(a):
    """Keep bf16/f32 storage as-is (bf16 halves HBM traffic); cast the rest."""
    a = jnp.asarray(a)
    if a.dtype in (jnp.float32, jnp.bfloat16):
        return a
    return a.astype(jnp.float32)


def _pick_layout(n):
    """Choose a lane width (multiple of 128) so reshape is a pure layout no-op."""
    for lanes in (1024, 512, 256, 128):
        if n % lanes == 0 and n // lanes >= 8:
            return lanes, 0
    # Tiny or awkward sizes only: pad the flat remainder (masked in-kernel).
    lanes = 128
    rows = max(8, _cdiv(n, lanes))
    return lanes, rows * lanes - n


# ---------------------------------------------------------------------------
# Kernel
# ---------------------------------------------------------------------------
def _focal_kernel(x_ref, t_ref, o_ref, acc_ref, *, gamma, rem_last, tm, lanes,
                  last_split, last_inner):
    s = pl.program_id(0)   # 'parallel' split (feeds both TensorCores on v7x)
    i = pl.program_id(1)   # 'arbitrary' streaming/reduction axis

    @pl.when(i == 0)
    def _init():
        acc_ref[...] = jnp.zeros_like(acc_ref)

    # Inputs stream at their storage dtype (bf16 stays bf16); compute in f32.
    x = x_ref[...].astype(jnp.float32)
    t = t_ref[...].astype(jnp.float32)

    # Numerically stable BCE-with-logits (PyTorch's formulation):
    #   bce = max(x, 0) - x*t + log1p(exp(-|x|))
    e = jnp.exp(-jnp.abs(x))
    bce = jnp.maximum(x, 0.0) - x * t + jnp.log1p(e)
    # pt = exp(-bce): exact for soft labels too.  alpha is folded into the
    # final host-side scale, so the hot loop never multiplies by it.
    pt = jnp.exp(-bce)

    gf = float(gamma)
    if gf.is_integer() and gf >= 0:
        w = _int_pow(1.0 - pt, int(gf))            # integer pow -> multiplies
    else:
        w = jnp.power(1.0 - pt, jnp.float32(gf))   # true pow only if needed
    focal = w * bce                                # (tm, lanes) f32

    def _accumulate(vals):
        # (tm, lanes) -> (tm//8, 8, lanes) is a pure re-tiling (no data moves
        # across the (8,128) vreg tile); the axis-0 sum is vreg-wise VALU adds
        # into a tiny (8, lanes) resident accumulator, so the per-step RMW is
        # negligible compared with the streamed block.
        acc_ref[...] += vals.reshape(tm // 8, 8, lanes).sum(axis=0)

    if rem_last < tm * lanes:
        # Only the globally-last block can contain padding / out-of-bounds
        # rows, so the mask stays off the hot path.  rem_last is a trace-time
        # constant and the index is tile-local -> no int32 overflow for any n.
        is_tail = jnp.logical_and(s == last_split, i == last_inner)

        @pl.when(jnp.logical_not(is_tail))
        def _hot():
            _accumulate(focal)

        @pl.when(is_tail)
        def _tail():
            row = jax.lax.broadcasted_iota(jnp.int32, (tm, lanes), 0)
            col = jax.lax.broadcasted_iota(jnp.int32, (tm, lanes), 1)
            idx = row * lanes + col
            _accumulate(jnp.where(idx < rem_last, focal, 0.0))
    else:
        _accumulate(focal)

    @pl.when(i == last_inner)
    def _finish():
        o_ref[0] = acc_ref[...]     # per-split partial sums; reduced in JAX


# ---------------------------------------------------------------------------
# Wrapper
# ---------------------------------------------------------------------------
def binary_focal_loss_pallas(logits, targets, gamma=2, alpha=1.0):
    """Scalar focal loss over arbitrarily-shaped logits/targets."""
    assert logits.shape == targets.shape, "input/target shape mismatch"
    n = int(math.prod(logits.shape)) if logits.ndim else 1

    x = _ingest(logits).reshape(-1)
    t = _ingest(targets).reshape(-1)

    lanes, pad = _pick_layout(n)
    if pad:
        # TODO(synk): sizes not divisible by 128 force one padded copy of the
        # flat inputs; the pad is < lanes and is masked out of the mean.
        x = jnp.concatenate([x, jnp.zeros((pad,), x.dtype)])
        t = jnp.concatenate([t, jnp.zeros((pad,), t.dtype)])

    rows = (n + pad) // lanes
    x2 = x.reshape(rows, lanes)       # layout no-op when pad == 0
    t2 = t.reshape(rows, lanes)

    # ~1 MiB f32 per streamed input block: on the flat part of the measured
    # HBM-roofline curve, while keeping the double-buffered working set
    # (2 inputs x 2 buffers + elementwise temporaries) well under v7x's VMEM.
    target_elems = 256 * 1024
    tm = min((rows // 8) * 8, max(8, (target_elems // lanes) // 8 * 8))
    blocks = _cdiv(rows, tm)

    # Prefer an even block count so the leading 'parallel' axis can feed both
    # TensorCores on v7x (no effect on v5e/v6e).
    if blocks % 2 != 0 and rows >= 16:
        for cand in range(tm - 8, max(8, tm // 2) - 1, -8):
            if _cdiv(rows, cand) % 2 == 0:
                tm, blocks = cand, _cdiv(rows, cand)
                break

    num_splits = 2 if (blocks >= 2 and blocks % 2 == 0) else 1
    inner = blocks // num_splits
    rem_last = n - (blocks - 1) * tm * lanes       # valid elems in last block

    kernel = partial(_focal_kernel, gamma=gamma, rem_last=rem_last, tm=tm,
                     lanes=lanes, last_split=num_splits - 1,
                     last_inner=inner - 1)

    gf = float(gamma)
    trans_per_elem = 3 if (gf.is_integer() and gf >= 0) else 5
    in_bytes = x2.dtype.itemsize + t2.dtype.itemsize

    out = pl.pallas_call(
        kernel,
        out_shape=jax.ShapeDtypeStruct((num_splits, 8, lanes), jnp.float32),
        grid=(num_splits, inner),
        in_specs=[pl.BlockSpec((tm, lanes), lambda s, i: (s * inner + i, 0)),
                  pl.BlockSpec((tm, lanes), lambda s, i: (s * inner + i, 0))],
        out_specs=pl.BlockSpec((1, 8, lanes), lambda s, i: (s, 0, 0)),
        scratch_shapes=[pltpu.VMEM((8, lanes), jnp.float32)],
        compiler_params=pltpu.CompilerParams(
            dimension_semantics=("parallel", "arbitrary"),
            # Working set is ~12 MiB; raise above v5e's 16 MiB scoped default
            # but stay within v7x's 32 MiB scoped / 64 MiB physical VMEM.
            vmem_limit_bytes=32 * 1024 * 1024),
        cost_estimate=pl.CostEstimate(
            flops=10 * rows * lanes,
            transcendentals=trans_per_elem * rows * lanes,
            bytes_accessed=rows * lanes * in_bytes + num_splits * 8 * lanes * 4),
    )(x2, t2)

    # alpha and the mean normalization are folded into one trivial host-side
    # scale of the per-split partial sums.
    return jnp.sum(out) * (float(alpha) / n)


class BinaryFocalLossPallas:
    """Mirrors the PyTorch BinaryFocalLoss module's forward."""

    def __init__(self, gamma=2, alpha=1):
        self.gamma = gamma
        self.alpha = alpha

    def __call__(self, input, target):
        return binary_focal_loss_pallas(input, target,
                                        gamma=self.gamma, alpha=self.alpha)


# ---------------------------------------------------------------------------
# Reference (plain JAX) for sanity check
# ---------------------------------------------------------------------------
def _reference(x, t, gamma=2, alpha=1):
    x = jnp.asarray(x).astype(jnp.float32)
    t = jnp.asarray(t).astype(jnp.float32)
    bce = jnp.maximum(x, 0.0) - x * t + jnp.log1p(jnp.exp(-jnp.abs(x)))
    pt = jnp.exp(-bce)
    return jnp.mean(alpha * (1.0 - pt) ** gamma * bce)


# ---------------------------------------------------------------------------
if __name__ == "__main__":
    key = jax.random.PRNGKey(0)
    k1, k2, k3, k4, k5, k6 = jax.random.split(key, 6)

    loss_mod = BinaryFocalLossPallas(gamma=2, alpha=1)

    # Case 1: spec-like small input (f32; divides cleanly -> zero-copy path).
    shape = (2, 4, 16, 16)
    logits = 2.0 * jax.random.normal(k1, shape, dtype=jnp.float32)
    targets = jax.random.bernoulli(k2, 0.5, shape).astype(jnp.float32)
    out = jax.block_until_ready(loss_mod(logits, targets))
    ref = _reference(logits, targets, gamma=2, alpha=1)
    assert jnp.allclose(out, ref, atol=1e-6, rtol=1e-4), (out, ref)

    # Case 2: awkward size (exercises the tiny-pad fallback + tail mask).
    shape2 = (3, 5, 7, 11)
    logits2 = 1.5 * jax.random.normal(k3, shape2, dtype=jnp.float32)
    targets2 = jax.random.bernoulli(k4, 0.3, shape2).astype(jnp.float32)
    out2 = jax.block_until_ready(loss_mod(logits2, targets2))
    ref2 = _reference(logits2, targets2, gamma=2, alpha=1)
    assert jnp.allclose(out2, ref2, atol=1e-6, rtol=1e-4), (out2, ref2)

    # Case 3: bf16 ingestion (half the HBM traffic; compute stays f32).
    shape3 = (4, 8, 32, 32)
    logits3 = (2.0 * jax.random.normal(k5, shape3, jnp.float32)).astype(jnp.bfloat16)
    targets3 = jax.random.bernoulli(k6, 0.5, shape3).astype(jnp.bfloat16)
    out3 = jax.block_until_ready(loss_mod(logits3, targets3))
    ref3 = _reference(logits3, targets3, gamma=2, alpha=1)
    assert jnp.allclose(out3, ref3, atol=1e-6, rtol=1e-4), (out3, ref3)

    print("KERNEL_OK")
</pallas_src>

<mosaic_0001>
module attributes {stable_mosaic.version = 11 : i64} {
  func.func @_focal_kernel(%arg0: i32, %arg1: i32, %arg2: memref<8x256xf32, #tpu.memory_space<vmem>>, %arg3: memref<8x256xf32, #tpu.memory_space<vmem>>, %arg4: memref<1x8x256xf32, #tpu.memory_space<vmem>>, %arg5: memref<8x256xf32, #tpu.memory_space<vmem>>) attributes {dimension_semantics = [#tpu.dimension_semantics<parallel>, #tpu.dimension_semantics<arbitrary>], iteration_bounds = array<i64: 1, 1>, scalar_prefetch = 0 : i64, scratch_operands = 1 : i64, tpu.core_type = #tpu.core_type<tc>, window_params = [{transform_indices = @transform_0, window_bounds = array<i64: 8, 256>}, {transform_indices = @transform_1, window_bounds = array<i64: 8, 256>}, {transform_indices = @transform_2, window_bounds = array<i64: 1, 8, 256>}]} {
    %c0_i32 = arith.constant 0 : i32
    %0 = arith.cmpi eq, %arg1, %c0_i32 : i32
    %1 = arith.extui %0 : i1 to i32
    %c0_i32_0 = arith.constant 0 : i32
    %2 = arith.cmpi ne, %1, %c0_i32_0 : i32
    scf.if %2 {
      %cst_14 = arith.constant 0.000000e+00 : f32
      %30 = vector.broadcast %cst_14 : f32 to vector<8x256xf32>
      %c0_15 = arith.constant 0 : index
      %c0_16 = arith.constant 0 : index
      %31 = vector.load %arg5[%c0_15, %c0_16] : memref<8x256xf32, #tpu.memory_space<vmem>>, vector<8x256xf32>
      tpu.vector_store %arg5[%c0_15, %c0_16], %30 {strides = array<i32>} : memref<8x256xf32, #tpu.memory_space<vmem>>, vector<8x256xf32>,
    } else {
    }
    %c0 = arith.constant 0 : index
    %c0_1 = arith.constant 0 : index
    %3 = vector.load %arg2[%c0, %c0_1] : memref<8x256xf32, #tpu.memory_space<vmem>>, vector<8x256xf32>
    %c0_2 = arith.constant 0 : index
    %c0_3 = arith.constant 0 : index
    %4 = vector.load %arg3[%c0_2, %c0_3] : memref<8x256xf32, #tpu.memory_space<vmem>>, vector<8x256xf32>
    %5 = math.absf %3 : vector<8x256xf32>
    %cst = arith.constant 0.000000e+00 : f32
    %6 = vector.broadcast %cst : f32 to vector<8x256xf32>
    %7 = arith.subf %6, %5 : vector<8x256xf32>
    %8 = math.exp %7 : vector<8x256xf32>
    %cst_4 = arith.constant 0.000000e+00 : f32
    %9 = vector.broadcast %cst_4 : f32 to vector<8x256xf32>
    %10 = arith.maximumf %3, %9 : vector<8x256xf32>
    %11 = arith.mulf %3, %4 : vector<8x256xf32>
    %12 = arith.subf %10, %11 : vector<8x256xf32>
    %13 = math.log1p %8 : vector<8x256xf32>
    %14 = arith.addf %12, %13 : vector<8x256xf32>
    %cst_5 = arith.constant 0.000000e+00 : f32
    %15 = vector.broadcast %cst_5 : f32 to vector<8x256xf32>
    %16 = arith.subf %15, %14 : vector<8x256xf32>
    %17 = math.exp %16 : vector<8x256xf32>
    %cst_6 = arith.constant 1.000000e+00 : f32
    %18 = vector.broadcast %cst_6 : f32 to vector<8x256xf32>
    %19 = arith.subf %18, %17 : vector<8x256xf32>
    %20 = arith.mulf %19, %19 : vector<8x256xf32>
    %21 = arith.mulf %20, %14 : vector<8x256xf32>
    %c0_7 = arith.constant 0 : index
    %c0_8 = arith.constant 0 : index
    %22 = vector.load %arg5[%c0_7, %c0_8] : memref<8x256xf32, #tpu.memory_space<vmem>>, vector<8x256xf32>
    %23 = vector.shape_cast %21 : vector<8x256xf32> to vector<1x8x256xf32>
    %cst_9 = arith.constant dense<0.000000e+00> : vector<8x256xf32>
    %24 = vector.multi_reduction <add>, %23, %cst_9 [0] : vector<1x8x256xf32> to vector<8x256xf32>
    %25 = arith.addf %22, %24 : vector<8x256xf32>
    %c0_10 = arith.constant 0 : index
    %c0_11 = arith.constant 0 : index
    %26 = vector.load %arg5[%c0_10, %c0_11] : memref<8x256xf32, #tpu.memory_space<vmem>>, vector<8x256xf32>
    tpu.vector_store %arg5[%c0_10, %c0_11], %25 {strides = array<i32>} : memref<8x256xf32, #tpu.memory_space<vmem>>, vector<8x256xf32>,
    %c0_i32_12 = arith.constant 0 : i32
    %27 = arith.cmpi eq, %arg1, %c0_i32_12 : i32
    %28 = arith.extui %27 : i1 to i32
    %c0_i32_13 = arith.constant 0 : i32
    %29 = arith.cmpi ne, %28, %c0_i32_13 : i32
    scf.if %29 {
      %c0_14 = arith.constant 0 : index
      %c0_15 = arith.constant 0 : index
      %30 = vector.load %arg5[%c0_14, %c0_15] : memref<8x256xf32, #tpu.memory_space<vmem>>, vector<8x256xf32>
      %c0_16 = arith.constant 0 : index
      %c0_17 = arith.constant 0 : index
      %c0_18 = arith.constant 0 : index
      %31 = vector.load %arg4[%c0_16, %c0_17, %c0_18] : memref<1x8x256xf32, #tpu.memory_space<vmem>>, vector<1x8x256xf32>
      %32 = vector.shape_cast %31 : vector<1x8x256xf32> to vector<8x256xf32>
      %33 = vector.shape_cast %30 : vector<8x256xf32> to vector<1x8x256xf32>
      tpu.vector_store %arg4[%c0_16, %c0_17, %c0_18], %33 {strides = array<i32>} : memref<1x8x256xf32, #tpu.memory_space<vmem>>, vector<1x8x256xf32>,
    } else {
    }
    return
  }
  func.func @transform_0(%arg0: i32, %arg1: i32) -> (i32, i32) {
    %c1_i32 = arith.constant 1 : i32
    %0 = arith.muli %arg0, %c1_i32 : i32
    %1 = arith.addi %0, %arg1 : i32
    %c0_i32 = arith.constant 0 : i32
    %c0_i32_0 = arith.constant 0 : i32
    return %1, %c0_i32 : i32, i32
  }
  func.func @transform_1(%arg0: i32, %arg1: i32) -> (i32, i32) {
    %c1_i32 = arith.constant 1 : i32
    %0 = arith.muli %arg0, %c1_i32 : i32
    %1 = arith.addi %0, %arg1 : i32
    %c0_i32 = arith.constant 0 : i32
    %c0_i32_0 = arith.constant 0 : i32
    return %1, %c0_i32 : i32, i32
  }
  func.func @transform_2(%arg0: i32, %arg1: i32) -> (i32, i32, i32) {
    %c0_i32 = arith.constant 0 : i32
    %c0_i32_0 = arith.constant 0 : i32
    %c0_i32_1 = arith.constant 0 : i32
    return %arg0, %c0_i32, %c0_i32_0 : i32, i32, i32
  }
}

</mosaic_0001>

<bundles_post_ra>
// kernel: tpu_custom_call.1
= control target key start
LH: loop header
LB: loop body
LE: loop exit
PB: predicated region body
PF: predicated region fallthrough
CT: control target
= control target key end

     0   :  { %7 = vsyncpa [#allocation4], 0  ;;  %s274_s0 = inlined_call_operand.hbm [shape: f32[8,256], index: 0, kind: input, shape index: {}]   ;;  %s275_s1 = inlined_call_operand.hbm [shape: f32[8,256], index: 1, kind: input, shape index: {}]   ;;  %s276_s2 = inlined_call_operand.hbm [shape: f32[1,8,256], index: 2, kind: output, shape index: {}]  }
   0x1   :  { %8 = vsyncpa [#allocation7], 0 }
   0x2   :  { %9 = vsyncpa [#allocation5], 0  ;;  %s220_s9 = smov [#allocation3]   ;;  %s221_s11 = smov [#allocation6]  }
   0x3   :  { %s20_s10 = sshll.u32 %s220_s9, 4  ;;  %s34_s12 = sshll.u32 %s221_s11, 4  ;;  %s21_s10 = int_to_ptr.vmem [resolvable:$true] %s20_s10  ;;  %s35_s12 = int_to_ptr.vmem [resolvable:$true] %s34_s12 }
   0x4   :  { %s148_s15 = scalar_lea.hbm %s274_s0, 256 }
   0x5   :  { %p149_p0 = scmp.ne.s32.totalorder %s274_s0, %s148_s15  ;;  %p152_p1 = scmp.lt.u32.totalorder %s148_s15, %s274_s0 }
   0x7   :  { %p154_p2 = pnand %p152_p1, %p149_p0 }
   0x9   :  { %157 = shalt.err (!%p154_p2)
}
   0xa   :  { %s158_s20 = scalar_lea.vmem %s21_s10, 256  ;;  %p163_p4 = scmp.lt.s32.totalorder %s21_s10, %s21_s10 }
   0xb   :  { %p159_p3 = scmp.ne.s32.totalorder %s21_s10, %s158_s20  ;;  %p164_p5 = scmp.lt.s32.totalorder %s158_s20, %s158_s20 }
   0xd   :  { %p165_p6 = por %p164_p5, %p163_p4 }
   0xf   :  { %p166_p7 = pnand %p165_p6, %p159_p3 }
  0x11   :  { %169 = shalt.err (!%p166_p7)
}
  0x12   :  { %23 = dma.hbm_to_vmem [thread:$0]  %s274_s0, 256, %s21_s10, [#allocation4]  }
  0x13   :  { %s170_s25 = scalar_lea.hbm %s275_s1, 256 }
  0x14   :  { %p171_p8 = scmp.ne.s32.totalorder %s275_s1, %s170_s25  ;;  %p174_p9 = scmp.lt.u32.totalorder %s170_s25, %s275_s1 }
  0x16   :  { %p176_p10 = pnand %p174_p9, %p171_p8 }
  0x18   :  { %179 = shalt.err (!%p176_p10)
}
  0x19   :  { %s180_s30 = scalar_lea.vmem %s35_s12, 256  ;;  %p185_p12 = scmp.lt.s32.totalorder %s35_s12, %s35_s12 }
  0x1a   :  { %p181_p11 = scmp.ne.s32.totalorder %s35_s12, %s180_s30  ;;  %p186_p13 = scmp.lt.s32.totalorder %s180_s30, %s180_s30 }
  0x1c   :  { %p187_p0 = por %p186_p13, %p185_p12 }
  0x1e   :  { %p188_p1 = pnand %p187_p0, %p181_p11 }
  0x20   :  { %191 = shalt.err (!%p188_p1)
}
  0x21   :  { %37 = dma.hbm_to_vmem [thread:$0]  %s275_s1, 256, %s35_s12, [#allocation7]  }
  0x22   :  { %214 = dma.done.wait [#allocation4], 256  }
  0x23   :  { %215 = vsyncadd [#allocation4], 4294967040 }
  0x24   :  { %216 = dma.done.wait [#allocation7], 256  }
  0x25   :  { %217 = vsyncadd [#allocation7], 4294967040  ;;  %v52_v0 = vld [vmem:[#allocation3] sm:$0xff]  ;;  %v53_v1 = vld [vmem:[#allocation3 + $0x8] sm:$0xff]  ;;  %s222_s1 = smov [#allocation8]  }
  0x26   :  { %v56_v2 = vand.u32 2147483647, %v52_v0  ;;  %v57_v3 = vand.u32 2147483647, %v53_v1  ;;  %v54_v14 = vld [vmem:[#allocation6] sm:$0xff]  ;;  %v55_v15 = vld [vmem:[#allocation6 + $0x8] sm:$0xff] }
  0x27   :  { %v64_v17 = vmax.f32 %v52_v0, 0.0  ;;  %v66_v18 = vmul.f32 %v54_v14, %v52_v0  ;;  %v65_v21 = vmax.f32 %v53_v1, 0.0  ;;  %v67_v22 = vmul.f32 %v55_v15, %v53_v1  ;;  %s123_s4 = sshll.u32 %s222_s1, 4  ;;  %s124_s4 = int_to_ptr.vmem [resolvable:$true] %s123_s4 }
  0x28   :  { %v58_v4 = vsub.f32 0.0, %v56_v2  ;;  %v59_v5 = vsub.f32 0.0, %v57_v3  ;;  %s192_s5 = scalar_lea.vmem %s124_s4, 256  ;;  %p197_p3 = scmp.lt.s32.totalorder %s124_s4, %s124_s4 }
  0x29   :  { %v68_v26 = vsub.f32 %v64_v17, %v66_v18  ;;  %v69_v30 = vsub.f32 %v65_v21, %v67_v22  ;;  %p193_p2 = scmp.ne.s32.totalorder %s124_s4, %s192_s5  ;;  %p198_p4 = scmp.lt.s32.totalorder %s192_s5, %s192_s5 }
  0x2a   :  { %v60_v6 = vmul.f32 1.442695, %v58_v4  ;;  %v62_v7 = vmul.f32 1.442695, %v59_v5 }
  0x2b   :  { %p199_p5 = por %p198_p4, %p197_p3 }
  0x2c   :  { %136 = vpow2.f32 %v60_v6 }
  0x2d   :  { %138 = vpow2.f32 %v62_v7  ;;  %p200_p6 = pnand %p199_p5, %p193_p2 }
  0x36   :  { %v137_v8 = vpop.eup %136 }
  0x37   :  { %v139_v9 = vpop.eup %138  ;;  %v70_v10 = vadd.f32 1.0, %v137_v8  ;;  %v73_v12 = vmul.f32 -0.5, %v137_v8  ;;  %v76_v19 = vand.u32 2147483647, %v137_v8 }
  0x38   :  { %v79_v11 = vadd.f32 1.0, %v139_v9  ;;  %v82_v13 = vmul.f32 -0.5, %v139_v9  ;;  %v85_v23 = vand.u32 2147483647, %v139_v9 }
  0x39   :  { %140 = vlog2.f32 %v70_v10  ;;  %v74_v16 = vadd.f32 1.0, %v73_v12  ;;  %vm77_vm0 = vcmp.lt.f32.partialorder %v76_v19, 0.0004427343 }
  0x3a   :  { %142 = vlog2.f32 %v79_v11  ;;  %v83_v20 = vadd.f32 1.0, %v82_v13  ;;  %vm86_vm1 = vcmp.lt.f32.partialorder %v85_v23, 0.0004427343 }
  0x3b   :  { %v75_v24 = vmul.f32 %v137_v8, %v74_v16 }
  0x3c   :  { %v84_v27 = vmul.f32 %v139_v9, %v83_v20 }
  0x43   :  { %v141_v25 = vpop.eup %140 }
  0x44   :  { %v143_v28 = vpop.eup %142  ;;  %v72_v29 = vmul.f32 0.6931472, %v141_v25 }
  0x45   :  { %v81_v31 = vmul.f32 0.6931472, %v143_v28 }
  0x46   :  { %v78_v32 = vsel %vm77_vm0, %v75_v24, %v72_v29 }
  0x47   :  { %v88_v33 = vadd.f32 %v78_v32, %v68_v26  ;;  %v87_v34 = vsel %vm86_vm1, %v84_v27, %v81_v31 }
  0x48   :  { %v89_v35 = vadd.f32 %v87_v34, %v69_v30 }
  0x49   :  { %v90_v36 = vsub.f32 0.0, %v88_v33 }
  0x4a   :  { %v91_v37 = vsub.f32 0.0, %v89_v35 }
  0x4b   :  { %v92_v38 = vmul.f32 1.442695, %v90_v36 }
  0x4c   :  { %v94_v39 = vmul.f32 1.442695, %v91_v37 }
  0x4d   :  { %144 = vpow2.f32 %v92_v38 }
  0x4e   :  { %146 = vpow2.f32 %v94_v39 }
  0x57   :  { %v145_v40 = vpop.eup %144 }
  0x58   :  { %v147_v41 = vpop.eup %146  ;;  %v96_v42 = vsub.f32 1.0, %v145_v40 }
  0x59   :  { %v97_v43 = vsub.f32 1.0, %v147_v41 }
  0x5a   :  { %v98_v44 = vmul.f32 %v96_v42, %v96_v42 }
  0x5b   :  { %v99_v45 = vmul.f32 %v97_v43, %v97_v43 }
  0x5c   :  { %v100_v46 = vmul.f32 %v98_v44, %v88_v33 }
  0x5d   :  { %v101_v47 = vmul.f32 %v99_v45, %v89_v35 }
  0x5e   :  { %115 = vst [vmem:[#allocation8] sm:$0xff] %v100_v46 }
  0x5f   :  { %116 = vst [vmem:[#allocation8 + $0x8] sm:$0xff] %v101_v47 }
  0x60   :  { %203 = shalt.err (!%p200_p6)
}
  0x61   :  { %s204_s8 = scalar_lea.hbm %s276_s2, 256 }
  0x62   :  { %p205_p7 = scmp.ne.s32.totalorder %s276_s2, %s204_s8  ;;  %p208_p8 = scmp.lt.u32.totalorder %s204_s8, %s276_s2 }
  0x64   :  { %p210_p9 = pnand %p208_p8, %p205_p7 }
  0x66   :  { %213 = shalt.err (!%p210_p9)
}
  0x67   :  { %126 = dma.vmem_to_hbm [thread:$0]  %s124_s4, 256, %s276_s2, [#allocation5]  }
  0x68   :  { %218 = dma.done.wait [#allocation5], 256  }
  0x69   :  { %219 = vsyncadd [#allocation5], 4294967040 }
  0x6a   :  { %130 = vsyncpa [#allocation4], 1 }
  0x6b   :  { %131 = vsyncpa [#allocation7], 1 }
  0x6c   :  { %132 = vsyncpa [#allocation5], 1 }

</bundles_post_ra>
